<compile_context>
chip_gen: v6e
topology: v6e:2x2x1
jax: 0.10.0
libtpu: 0.0.40
codegen_flags: <defaults>
</compile_context>

<pallas_src>
import jax
import jax.numpy as jnp
from jax import lax
from jax.experimental import pallas as pl
from jax.experimental.pallas import tpu as pltpu


def retriever_head_kernel(hs_ref, mask_ref, w1_ref, b1_ref, w2_ref, b2_ref,
                          out_ref):
    # hs_ref  : (TB, S, H) hidden-state tile (native dtype, e.g. bf16)
    # mask_ref: (TB, S)    attention mask (float32)
    # w1_ref  : (H, H), b1_ref: (1, H)   -- VMEM-resident, untiled
    # w2_ref  : (H, V), b2_ref: (1, V)   -- VMEM-resident, untiled
    # out_ref : (TB, V)
    hs = hs_ref[...].astype(jnp.float32)          # (TB, S, H)
    mask = mask_ref[...].astype(jnp.float32)      # (TB, S)

    # Fused pooling:
    #   combined = hs[:, 0, :] + (hs * mask[..., None]).sum(1) / mask.sum(1)
    # expressed with per-row pooling weights
    #   w_pool[t, s] = mask[t, s] / denom[t] + [s == 0]
    # so combined = sum_s w_pool[t, s] * hs[t, s, :]  (VPU mul + XLU sublane
    # reduce; no q=1 MXU matmul, no (TB, S, H) masked temporary).
    denom = jnp.sum(mask, axis=1, keepdims=True)                      # (TB,1)
    # NOTE: the clamp deviates from PyTorch only for a real row whose
    # attention_mask is all zeros (PyTorch would give NaN/Inf); it keeps
    # ragged-tile garbage rows finite.  Real rows (denom >= 1) are unchanged.
    inv_denom = pl.reciprocal(jnp.maximum(denom, 1.0), approx=False)  # EUP
    s_pos = lax.broadcasted_iota(jnp.int32, mask.shape, 1)            # (TB,S)
    w_pool = mask * inv_denom + (s_pos == 0).astype(jnp.float32)      # (TB,S)
    combined = jnp.sum(hs * w_pool[:, :, None], axis=1)               # (TB,H)

    # Projection MLP (dropout layers are identity in eval mode).
    h = jnp.dot(combined, w1_ref[...],
                preferred_element_type=jnp.float32) + b1_ref[...]
    h = jnp.maximum(h, 0.0)
    p = jnp.dot(h, w2_ref[...],
                preferred_element_type=jnp.float32) + b2_ref[...]     # (TB,V)

    # F.normalize(p, p=2, dim=1): p / max(||p||_2, eps), eps = 1e-12
    norm = jnp.sqrt(jnp.sum(p * p, axis=1, keepdims=True))
    inv_norm = pl.reciprocal(jnp.maximum(norm, 1e-12), approx=False)  # EUP
    out_ref[...] = (p * inv_norm).astype(out_ref.dtype)


def _vmem_budgets():
    """(hs_tile_budget_bytes, vmem_limit_cap_bytes), generation-aware."""
    try:
        cap = int(getattr(pltpu.get_tpu_info(), "vmem_capacity_bytes",
                          64 << 20))
    except Exception:
        cap = 64 << 20                       # conservative: assume v7x-like
    if cap >= (100 << 20):                   # v5e / v6e: 128 MiB VMEM per TC
        return 64 << 20, 100 << 20
    return 24 << 20, 48 << 20                # v7x: 64 MiB VMEM per TC


def _choose_batch_tile(B, S, H, hs_elem_bytes, hs_budget_bytes):
    """Batch tile: B itself when B <= 8 (block dims == array dims), otherwise
    the largest power of two in [8, 512] whose double-buffered hs tile fits
    the budget, halved until the grid has >= 2 steps (pipelining + v7x
    megacore sharding)."""
    if B <= 8:
        return B
    per_row = 2 * S * H * hs_elem_bytes      # double-buffered hs bytes / row
    tb = 512
    while tb > 8 and tb * per_row > hs_budget_bytes:
        tb //= 2
    while tb > 8 and pl.cdiv(B, tb) < 2:
        tb //= 2
    return tb


def retriever_head(last_hidden_state, attention_mask, w1, b1, w2, b2):
    """Pooling + projection MLP + L2-normalize in one Pallas kernel.

    `last_hidden_state` is streamed in its native dtype (pass bf16 for half
    the HBM traffic); no wrapper-side pad/astype copies of the big tensor.
    """
    B, S, H = last_hidden_state.shape
    V = w2.shape[1]

    hs_elem = jnp.dtype(last_hidden_state.dtype).itemsize
    hs_budget, vmem_cap = _vmem_budgets()
    TB = _choose_batch_tile(B, S, H, hs_elem, hs_budget)
    grid = (pl.cdiv(B, TB),)

    mask_f = attention_mask.astype(jnp.float32)        # (B, S): tiny
    w1f = w1.astype(jnp.float32)
    w2f = w2.astype(jnp.float32)
    b1_2d = b1.reshape(1, H).astype(jnp.float32)
    b2_2d = b2.reshape(1, V).astype(jnp.float32)

    vmem_bytes = int(
        2 * TB * S * H * hs_elem             # double-buffered hs tiles
        + 2 * TB * S * 4                     # double-buffered mask tiles
        + 2 * TB * V * 4                     # double-buffered output tiles
        + (H * H + H + H * V + V) * 4        # VMEM-resident weights (1 copy)
        + (8 << 20))                         # headroom
    vmem_bytes = max(min(vmem_bytes, vmem_cap), 16 << 20)

    weight_spec = pl.BlockSpec(memory_space=pltpu.MemorySpace.VMEM)
    return pl.pallas_call(
        retriever_head_kernel,
        out_shape=jax.ShapeDtypeStruct((B, V), jnp.float32),
        grid=grid,
        in_specs=[
            # Batch-tiled activations (hs in native dtype; S block == full S;
            # ragged last batch tile -> no wrapper-side pad of (B, S, H)).
            pl.BlockSpec((TB, S, H), lambda i: (i, 0, 0)),
            pl.BlockSpec((TB, S), lambda i: (i, 0)),
            # Weights/biases: whole-array VMEM residents (no double-buffer).
            weight_spec, weight_spec, weight_spec, weight_spec,
        ],
        out_specs=pl.BlockSpec((TB, V), lambda i: (i, 0)),
        compiler_params=pltpu.CompilerParams(
            dimension_semantics=("parallel",),
            vmem_limit_bytes=vmem_bytes),
    )(last_hidden_state, mask_f, w1f, b1_2d, w2f, b2_2d)


class EnhancedDenseRetrieverJAX:
    """Deterministic-weight JAX/Pallas port of EnhancedDenseRetriever."""

    def __init__(self, vocab_size=1000, hidden_size=128, vector_dim=128,
                 seed=0):
        self.hidden_size = hidden_size
        self.vector_dim = vector_dim
        k = jax.random.PRNGKey(seed)
        k_emb, k_w1, k_b1, k_w2, k_b2 = jax.random.split(k, 5)
        # Stand-in encoder: bf16 token embedding table, so the streamed
        # (B, S, H) hidden-state tensor is half the HBM bytes.
        self.embedding = (jax.random.normal(
            k_emb, (vocab_size, hidden_size), jnp.float32)
            * 0.02).astype(jnp.bfloat16)
        # projection[0]: Linear(H, H)
        lim1 = 1.0 / (hidden_size ** 0.5)
        self.w1 = jax.random.uniform(
            k_w1, (hidden_size, hidden_size), jnp.float32, -lim1, lim1)
        self.b1 = jax.random.uniform(
            k_b1, (hidden_size,), jnp.float32, -lim1, lim1)
        # projection[3]: Linear(H, V)
        lim2 = 1.0 / (hidden_size ** 0.5)
        self.w2 = jax.random.uniform(
            k_w2, (hidden_size, vector_dim), jnp.float32, -lim2, lim2)
        self.b2 = jax.random.uniform(
            k_b2, (vector_dim,), jnp.float32, -lim2, lim2)

    def __call__(self, input_ids, attention_mask):
        # TODO(synk): the pretrained BERT encoder is not implemented; a
        #             deterministic bf16 embedding lookup stands in for
        #             outputs.last_hidden_state.  Fusing this gather into the
        #             kernel (scalar-prefetch row gather) would remove one
        #             more HBM write+read of the dominant tensor.
        last_hidden_state = self.embedding[input_ids]          # (B, S, H) bf16
        # Pallas hot path: pooling + projection MLP + L2 normalize.
        return retriever_head(last_hidden_state, attention_mask,
                              self.w1, self.b1, self.w2, self.b2)


if __name__ == "__main__":
    B, S, H, V, VOCAB = 2, 8, 128, 128, 1000

    key = jax.random.PRNGKey(0)
    k_ids, _ = jax.random.split(key)
    input_ids = jax.random.randint(k_ids, (B, S), 0, VOCAB, dtype=jnp.int32)
    # Simple attention mask: first row fully attended, second row half padded.
    attention_mask = jnp.array(
        [[1] * S, [1] * (S // 2) + [0] * (S - S // 2)], dtype=jnp.int32)

    model = EnhancedDenseRetrieverJAX(vocab_size=VOCAB, hidden_size=H,
                                      vector_dim=V, seed=0)
    out = model(input_ids, attention_mask)
    out = jax.block_until_ready(out)

    assert out.shape == (B, V), out.shape
    assert bool(jnp.all(jnp.isfinite(out)))
    # Sanity: rows are unit-norm (L2 normalize).
    norms = jnp.linalg.norm(out, axis=1)
    assert jnp.allclose(norms, 1.0, atol=1e-4), norms

    # Cross-check against a pure-JAX reference of the same head (same bf16
    # hidden states, f32 compute -- matches the kernel's numerics).
    hs_ref = model.embedding[input_ids].astype(jnp.float32)
    m = attention_mask.astype(jnp.float32)
    combined = hs_ref[:, 0, :] + (hs_ref * m[:, :, None]).sum(1) / m.sum(
        -1, keepdims=True)
    h = jnp.maximum(combined @ model.w1 + model.b1, 0.0)
    p = h @ model.w2 + model.b2
    ref = p / jnp.maximum(jnp.linalg.norm(p, axis=1, keepdims=True), 1e-12)
    assert jnp.allclose(out, ref, atol=1e-4, rtol=1e-4)

    print("KERNEL_OK")
</pallas_src>

<mosaic_0001>
module attributes {stable_mosaic.version = 11 : i64} {
  func.func @retriever_head_kernel(%arg0: i32, %arg1: memref<2x8x128xbf16, #tpu.memory_space<vmem>>, %arg2: memref<2x8xf32, #tpu.memory_space<vmem>>, %arg3: memref<128x128xf32, #tpu.memory_space<vmem>>, %arg4: memref<1x128xf32, #tpu.memory_space<vmem>>, %arg5: memref<128x128xf32, #tpu.memory_space<vmem>>, %arg6: memref<1x128xf32, #tpu.memory_space<vmem>>, %arg7: memref<2x128xf32, #tpu.memory_space<vmem>>) attributes {dimension_semantics = [#tpu.dimension_semantics<parallel>], iteration_bounds = array<i64: 1>, scalar_prefetch = 0 : i64, scratch_operands = 0 : i64, tpu.core_type = #tpu.core_type<tc>, window_params = [{transform_indices = @transform_0, window_bounds = array<i64: 2, 8, 128>}, {transform_indices = @transform_1, window_bounds = array<i64: 2, 8>}, {pipeline_mode = #tpu.pipeline_mode<synchronous>, transform_indices = @transform_2, window_bounds = array<i64: 128, 128>}, {pipeline_mode = #tpu.pipeline_mode<synchronous>, transform_indices = @transform_3, window_bounds = array<i64: 1, 128>}, {pipeline_mode = #tpu.pipeline_mode<synchronous>, transform_indices = @transform_4, window_bounds = array<i64: 128, 128>}, {pipeline_mode = #tpu.pipeline_mode<synchronous>, transform_indices = @transform_5, window_bounds = array<i64: 1, 128>}, {transform_indices = @transform_6, window_bounds = array<i64: 2, 128>}]} {
    %c0 = arith.constant 0 : index
    %c0_0 = arith.constant 0 : index
    %c0_1 = arith.constant 0 : index
    %0 = vector.load %arg1[%c0, %c0_0, %c0_1] : memref<2x8x128xbf16, #tpu.memory_space<vmem>>, vector<2x8x128xbf16>
    %1 = arith.extf %0 : vector<2x8x128xbf16> to vector<2x8x128xf32>
    %c0_2 = arith.constant 0 : index
    %c0_3 = arith.constant 0 : index
    %2 = vector.load %arg2[%c0_2, %c0_3] : memref<2x8xf32, #tpu.memory_space<vmem>>, vector<2x8xf32>
    %cst = arith.constant dense<0.000000e+00> : vector<2xf32>
    %3 = vector.multi_reduction <add>, %2, %cst [1] : vector<2x8xf32> to vector<2xf32>
    %4 = vector.shape_cast %3 : vector<2xf32> to vector<2x1xf32>
    %cst_4 = arith.constant 1.000000e+00 : f32
    %5 = vector.broadcast %cst_4 : f32 to vector<2x1xf32>
    %6 = arith.maximumf %4, %5 : vector<2x1xf32>
    %7 = tpu.reciprocal %6 : vector<2x1xf32> -> vector<2x1xf32>
    %8 = tpu.iota {dimensions = array<i32: 1>} : vector<2x8xi32>
    %9 = vector.broadcast %7 : vector<2x1xf32> to vector<2x8xf32>
    %10 = arith.mulf %2, %9 : vector<2x8xf32>
    %c0_i32 = arith.constant 0 : i32
    %11 = vector.broadcast %c0_i32 : i32 to vector<2x8xi32>
    %12 = arith.cmpi eq, %8, %11 : vector<2x8xi32>
    %13 = arith.extui %12 : vector<2x8xi1> to vector<2x8xi32>
    %14 = arith.sitofp %13 : vector<2x8xi32> to vector<2x8xf32>
    %15 = arith.addf %10, %14 : vector<2x8xf32>
    %16 = vector.shape_cast %15 : vector<2x8xf32> to vector<2x8x1xf32>
    %17 = vector.broadcast %16 : vector<2x8x1xf32> to vector<2x8x128xf32>
    %18 = arith.mulf %1, %17 : vector<2x8x128xf32>
    %cst_5 = arith.constant dense<0.000000e+00> : vector<2x128xf32>
    %19 = vector.multi_reduction <add>, %18, %cst_5 [1] : vector<2x8x128xf32> to vector<2x128xf32>
    %c0_6 = arith.constant 0 : index
    %c0_7 = arith.constant 0 : index
    %20 = vector.load %arg3[%c0_6, %c0_7] : memref<128x128xf32, #tpu.memory_space<vmem>>, vector<128x128xf32>
    %cst_8 = arith.constant dense<0.000000e+00> : vector<2x128xf32>
    %21 = tpu.matmul %19, %20, %cst_8 {dimension_numbers = #tpu.dot_dimension_numbers<[1], [0], [0], [1], [0, 0, 1, 1], [], []>} : vector<2x128xf32>, vector<128x128xf32>, vector<2x128xf32> -> vector<2x128xf32>
    %c0_9 = arith.constant 0 : index
    %c0_10 = arith.constant 0 : index
    %22 = vector.load %arg4[%c0_9, %c0_10] : memref<1x128xf32, #tpu.memory_space<vmem>>, vector<1x128xf32>
    %23 = vector.broadcast %22 : vector<1x128xf32> to vector<2x128xf32>
    %24 = arith.addf %21, %23 : vector<2x128xf32>
    %cst_11 = arith.constant 0.000000e+00 : f32
    %25 = vector.broadcast %cst_11 : f32 to vector<2x128xf32>
    %26 = arith.maximumf %24, %25 : vector<2x128xf32>
    %c0_12 = arith.constant 0 : index
    %c0_13 = arith.constant 0 : index
    %27 = vector.load %arg5[%c0_12, %c0_13] : memref<128x128xf32, #tpu.memory_space<vmem>>, vector<128x128xf32>
    %cst_14 = arith.constant dense<0.000000e+00> : vector<2x128xf32>
    %28 = tpu.matmul %26, %27, %cst_14 {dimension_numbers = #tpu.dot_dimension_numbers<[1], [0], [0], [1], [0, 0, 1, 1], [], []>} : vector<2x128xf32>, vector<128x128xf32>, vector<2x128xf32> -> vector<2x128xf32>
    %c0_15 = arith.constant 0 : index
    %c0_16 = arith.constant 0 : index
    %29 = vector.load %arg6[%c0_15, %c0_16] : memref<1x128xf32, #tpu.memory_space<vmem>>, vector<1x128xf32>
    %30 = vector.broadcast %29 : vector<1x128xf32> to vector<2x128xf32>
    %31 = arith.addf %28, %30 : vector<2x128xf32>
    %32 = arith.mulf %31, %31 : vector<2x128xf32>
    %cst_17 = arith.constant dense<0.000000e+00> : vector<2xf32>
    %33 = vector.multi_reduction <add>, %32, %cst_17 [1] : vector<2x128xf32> to vector<2xf32>
    %34 = vector.shape_cast %33 : vector<2xf32> to vector<2x1xf32>
    %35 = math.sqrt %34 : vector<2x1xf32>
    %cst_18 = arith.constant 9.99999996E-13 : f32
    %36 = vector.broadcast %cst_18 : f32 to vector<2x1xf32>
    %37 = arith.maximumf %35, %36 : vector<2x1xf32>
    %38 = tpu.reciprocal %37 : vector<2x1xf32> -> vector<2x1xf32>
    %39 = vector.broadcast %38 : vector<2x1xf32> to vector<2x128xf32>
    %40 = arith.mulf %31, %39 : vector<2x128xf32>
    %c0_19 = arith.constant 0 : index
    %c0_20 = arith.constant 0 : index
    %41 = vector.load %arg7[%c0_19, %c0_20] : memref<2x128xf32, #tpu.memory_space<vmem>>, vector<2x128xf32>
    tpu.vector_store %arg7[%c0_19, %c0_20], %40 {strides = array<i32>} : memref<2x128xf32, #tpu.memory_space<vmem>>, vector<2x128xf32>,
    return
  }
  func.func @transform_0(%arg0: i32) -> (i32, i32, i32) {
    %c0_i32 = arith.constant 0 : i32
    %c0_i32_0 = arith.constant 0 : i32
    %c0_i32_1 = arith.constant 0 : i32
    return %arg0, %c0_i32, %c0_i32_0 : i32, i32, i32
  }
  func.func @transform_1(%arg0: i32) -> (i32, i32) {
    %c0_i32 = arith.constant 0 : i32
    %c0_i32_0 = arith.constant 0 : i32
    return %arg0, %c0_i32 : i32, i32
  }
  func.func @transform_2(%arg0: i32) -> (i32, i32) {
    %c0_i32 = arith.constant 0 : i32
    %c0_i32_0 = arith.constant 0 : i32
    %c0_i32_1 = arith.constant 0 : i32
    return %c0_i32, %c0_i32_0 : i32, i32
  }
  func.func @transform_3(%arg0: i32) -> (i32, i32) {
    %c0_i32 = arith.constant 0 : i32
    %c0_i32_0 = arith.constant 0 : i32
    %c0_i32_1 = arith.constant 0 : i32
    return %c0_i32, %c0_i32_0 : i32, i32
  }
  func.func @transform_4(%arg0: i32) -> (i32, i32) {
    %c0_i32 = arith.constant 0 : i32
    %c0_i32_0 = arith.constant 0 : i32
    %c0_i32_1 = arith.constant 0 : i32
    return %c0_i32, %c0_i32_0 : i32, i32
  }
  func.func @transform_5(%arg0: i32) -> (i32, i32) {
    %c0_i32 = arith.constant 0 : i32
    %c0_i32_0 = arith.constant 0 : i32
    %c0_i32_1 = arith.constant 0 : i32
    return %c0_i32, %c0_i32_0 : i32, i32
  }
  func.func @transform_6(%arg0: i32) -> (i32, i32) {
    %c0_i32 = arith.constant 0 : i32
    %c0_i32_0 = arith.constant 0 : i32
    return %arg0, %c0_i32 : i32, i32
  }
}

</mosaic_0001>

<bundles_post_ra>
// kernel: tpu_custom_call.1
= control target key start
LH: loop header
LB: loop body
LE: loop exit
PB: predicated region body
PF: predicated region fallthrough
CT: control target
= control target key end

     0   :  { %11 = vsyncpa [#allocation3], 0  ;;  %s686_s0 = inlined_call_operand.hbm [shape: bf16[2,8,128], index: 0, kind: input, shape index: {}]   ;;  %s687_s1 = inlined_call_operand.hbm [shape: f32[2,8], index: 1, kind: input, shape index: {}]   ;;  %s688_s2 = inlined_call_operand.hbm [shape: f32[128,128], index: 2, kind: input, shape index: {}]   ;;  %s689_s3 = inlined_call_operand.vmem [shape: f32[1,128], index: 3, kind: input, shape index: {}]   ;;  %s690_s4 = inlined_call_operand.hbm [shape: f32[128,128], index: 4, kind: input, shape index: {}]   ;;  %s691_s5 = inlined_call_operand.vmem [shape: f32[1,128], index: 5, kind: input, shape index: {}]   ;;  %s692_s6 = inlined_call_operand.hbm [shape: f32[2,128], index: 6, kind: output, shape index: {}]  }
   0x1   :  { %12 = vsyncpa [#allocation6], 0 }
   0x2   :  { %13 = vsyncpa [#allocation9], 0 }
   0x3   :  { %14 = vsyncpa [#allocation4], 0  ;;  %s584_s21 = smov [#allocation5]   ;;  %s585_s23 = smov [#allocation2]  }
   0x4   :  { %s33_s22 = sshll.u32 %s584_s21, 4  ;;  %s20_s24 = sshll.u32 %s585_s23, 4  ;;  %s34_s22 = int_to_ptr.vmem [resolvable:$true] %s33_s22  ;;  %s21_s24 = int_to_ptr.vmem [resolvable:$true] %s20_s24 }
   0x5   :  { %s484_s25 = scalar_lea.vmem %s34_s22, 32  ;;  %p489_p1 = scmp.lt.s32.totalorder %s34_s22, %s34_s22 }
   0x6   :  { %p485_p0 = scmp.ne.s32.totalorder %s34_s22, %s484_s25  ;;  %p490_p2 = scmp.lt.s32.totalorder %s484_s25, %s484_s25 }
   0x8   :  { %p491_p3 = por %p490_p2, %p489_p1 }
   0xa   :  { %p492_p4 = pnand %p491_p3, %p485_p0 }
   0xc   :  { %495 = shalt.err (!%p492_p4)
}
   0xd   :  { %36 = dma.hbm_to_vmem [thread:$0]  %s687_s1, 32, %s34_s22, [#allocation6]  }
   0xe   :  { %s504_s28 = scalar_lea.vmem %s21_s24, 128  ;;  %p509_p6 = scmp.lt.s32.totalorder %s21_s24, %s21_s24 }
   0xf   :  { %p505_p5 = scmp.ne.s32.totalorder %s21_s24, %s504_s28  ;;  %p510_p7 = scmp.lt.s32.totalorder %s504_s28, %s504_s28 }
  0x11   :  { %p511_p8 = por %p510_p7, %p509_p6 }
  0x13   :  { %p512_p9 = pnand %p511_p8, %p505_p5 }
  0x15   :  { %515 = shalt.err (!%p512_p9)
}
  0x16   :  { %s586_s29 = smov 64   ;;  %s587_s30 = smov 4  }
  0x17   :  { %26 = dma.hbm_to_vmem [thread:$0]  %s686_s0, 128, %s21_s24, [#allocation3], %s586_s29, %s586_s29, %s587_s30  }
  0x18   :  { %s588_s9 = smov [#allocation7]  }
  0x19   :  { %s42_s10 = sshll.u32 %s588_s9, 4  ;;  %s43_s10 = int_to_ptr.vmem [resolvable:$true] %s42_s10 }
  0x1a   :  { %s524_s11 = scalar_lea.vmem %s43_s10, 2048  ;;  %p529_p11 = scmp.lt.s32.totalorder %s43_s10, %s43_s10 }
  0x1b   :  { %p525_p10 = scmp.ne.s32.totalorder %s43_s10, %s524_s11  ;;  %p530_p12 = scmp.lt.s32.totalorder %s524_s11, %s524_s11 }
  0x1d   :  { %p531_p13 = por %p530_p12, %p529_p11 }
  0x1f   :  { %p532_p0 = pnand %p531_p13, %p525_p10 }
  0x21   :  { %535 = shalt.err (!%p532_p0)
}
  0x22   :  { %s589_s1 = smov 128   ;;  %s590_s12 = smov 8  }
  0x23   :  { %48 = dma.hbm_to_vmem [thread:$0]  %s688_s2, 2048, %s43_s10, [#allocation6], %s589_s1, %s589_s1, %s590_s12  }
  0x24   :  { %s591_s15 = smov [#allocation8]  }
  0x25   :  { %s56_s16 = sshll.u32 %s591_s15, 4  ;;  %s57_s16 = int_to_ptr.vmem [resolvable:$true] %s56_s16 }
  0x26   :  { %s544_s0 = scalar_lea.vmem %s57_s16, 2048  ;;  %p549_p2 = scmp.lt.s32.totalorder %s57_s16, %s57_s16 }
  0x27   :  { %p545_p1 = scmp.ne.s32.totalorder %s57_s16, %s544_s0  ;;  %p550_p3 = scmp.lt.s32.totalorder %s544_s0, %s544_s0 }
  0x29   :  { %p551_p4 = por %p550_p3, %p549_p2 }
  0x2b   :  { %p552_p5 = pnand %p551_p4, %p545_p1 }
  0x2d   :  { %555 = shalt.err (!%p552_p5)
}
  0x2e   :  { %62 = dma.hbm_to_vmem [thread:$0]  %s690_s4, 2048, %s57_s16, [#allocation9], %s589_s1, %s589_s1, %s590_s12  }
  0x2f   :  { %576 = dma.done.wait [#allocation3], 128  }
  0x30   :  { %577 = vsyncadd [#allocation3], 4294967168 }
  0x31   :  { %578 = dma.done.wait [#allocation6], 2080  }
  0x32   :  { %579 = vsyncadd [#allocation6], 4294965216 }
  0x33   :  { %580 = dma.done.wait [#allocation9], 2048  }
  0x34   :  { %581 = vsyncadd [#allocation9], 4294965248  ;;  %vm82_vm0 = vcmask 58368   ;;  %v81_v0 = vld [vmem:[#allocation5] sm:$0x3]  ;;  %v592_v2 = vmov 0.0   ;;  %v88_v13 = vlaneseq }
  0x35   :  { %v83_v1 = vsel %vm82_vm0, %v81_v0, 0.0  ;;  %389 = vmatprep.subr.mxu0 %v592_v2  ;;  %424 = vmatprep.subr.mxu1 %v592_v2  ;;  %v138_v3 = vld [vmem:[#allocation7 + $0x78] sm:$0xff]  ;;  %v137_v4 = vld [vmem:[#allocation7 + $0x70] sm:$0xff]  ;;  %v136_v5 = vld [vmem:[#allocation7 + $0x68] sm:$0xff]  ;;  %vm593_vm2 = vmmov 0   ;;  %vm148_vm3 = vcmask 1041409  }
  0x36   :  { %84 = vadd.xlane.f32.xlu0 %v83_v1  ;;  %390 = vmatpush3.msra.mxu0 %v138_v3  ;;  %v135_v6 = vld [vmem:[#allocation7 + $0x60] sm:$0xff]  ;;  %v134_v7 = vld [vmem:[#allocation7 + $0x58] sm:$0xff]  ;;  %v133_v8 = vld [vmem:[#allocation7 + $0x50] sm:$0xff]  ;;  %v89_v14 = vand.u32 127, %v88_v13  ;;  %v96_v17 = vshrl.u32 %v88_v13, 7  ;;  %vm316_vm4 = vcmask 1041408  }
  0x37   :  { %391 = vmatprep.subr.mxu0 %v592_v2  ;;  %v132_v9 = vld [vmem:[#allocation7 + $0x48] sm:$0xff]  ;;  %v131_v10 = vld [vmem:[#allocation7 + $0x40] sm:$0xff]  ;;  %v130_v15 = vld [vmem:[#allocation7 + $0x38] sm:$0xff]  ;;  %421 = vmatprep.mubr.msk.f32.mxu0 %vm593_vm2, %v592_v2 }
  0x38   :  { %392 = vmatpush3.msra.mxu0 %v137_v4  ;;  %v129_v16 = vld [vmem:[#allocation7 + $0x30] sm:$0xff]  ;;  %vm91_vm1 = vcmp.eq.s32.totalorder %v89_v14, 0  ;;  %v128_v18 = vld [vmem:[#allocation7 + $0x28] sm:$0xff]  ;;  %v127_v19 = vld [vmem:[#allocation7 + $0x20] sm:$0xff]  ;;  %v104_v23 = vsub.s32 1, %v96_v17  ;;  %v97_v24 = vsub.s32 0, %v96_v17  ;;  %456 = vmatprep.mubr.msk.f32.mxu1 %vm593_vm2, %v592_v2 }
  0x39   :  { %393 = vmatprep.subr.mxu0 %v592_v2  ;;  %v348_v21 = vsel %vm91_vm1, 1.0, %v592_v2  ;;  %v126_v25 = vld [vmem:[#allocation7 + $0x18] sm:$0xff]  ;;  %v125_v27 = vld [vmem:[#allocation7 + $0x10] sm:$0xff]  ;;  %v124_v28 = vld [vmem:[#allocation7 + $0x8] sm:$0xff] }
  0x3a   :  { %394 = vmatpush3.msra.mxu0 %v136_v5  ;;  %v123_v31 = vld [vmem:[#allocation7] sm:$0xff]  ;;  %v237_v32 = vld [vmem:[#allocation8 + $0x78] sm:$0xff]  ;;  %v236_v33 = vld [vmem:[#allocation8 + $0x70] sm:$0xff] }
  0x3b   :  { %395 = vmatprep.subr.mxu0 %v592_v2  ;;  %425 = vmatpush3.msra.mxu1 %v237_v32  ;;  %v235_v34 = vld [vmem:[#allocation8 + $0x68] sm:$0xff]  ;;  %v234_v35 = vld [vmem:[#allocation8 + $0x60] sm:$0xff]  ;;  %v233_v36 = vld [vmem:[#allocation8 + $0x58] sm:$0xff] }
  0x3c   :  { %396 = vmatpush3.msra.mxu0 %v135_v6  ;;  %426 = vmatprep.subr.mxu1 %v592_v2  ;;  %v232_v37 = vld [vmem:[#allocation8 + $0x50] sm:$0xff]  ;;  %v231_v38 = vld [vmem:[#allocation8 + $0x48] sm:$0xff]  ;;  %v230_v39 = vld [vmem:[#allocation8 + $0x40] sm:$0xff] }
  0x3d   :  { %397 = vmatprep.subr.mxu0 %v592_v2  ;;  %427 = vmatpush3.msra.mxu1 %v236_v33  ;;  %v229_v40 = vld [vmem:[#allocation8 + $0x38] sm:$0xff]  ;;  %v228_v41 = vld [vmem:[#allocation8 + $0x30] sm:$0xff]  ;;  %v227_v42 = vld [vmem:[#allocation8 + $0x28] sm:$0xff] }
  0x3e   :  { %398 = vmatpush3.msra.mxu0 %v134_v7  ;;  %428 = vmatprep.subr.mxu1 %v592_v2  ;;  %v226_v43 = vld [vmem:[#allocation8 + $0x20] sm:$0xff]  ;;  %v225_v44 = vld [vmem:[#allocation8 + $0x18] sm:$0xff]  ;;  %v224_v1 = vld [vmem:[#allocation8 + $0x10] sm:$0xff] }
  0x3f   :  { %399 = vmatprep.subr.mxu0 %v592_v2  ;;  %429 = vmatpush3.msra.mxu1 %v235_v34  ;;  %v352_v45 = vld [vmem:[#allocation2] sm:$0xff]   ;;  %v223_v3 = vld [vmem:[#allocation8 + $0x8] sm:$0xff]  ;;  %v222_v4 = vld [vmem:[#allocation8] sm:$0xff] }
  0x40   :  { %400 = vmatpush3.msra.mxu0 %v133_v8  ;;  %430 = vmatprep.subr.mxu1 %v592_v2  ;;  %v354_v46 = vunpack.c.h.bf16 %v352_v45  ;;  %v353_v47 = vunpack.c.l.bf16 %v352_v45  ;;  %v349_v5 = vld [vmem:[%s689_s3] ss:$0 sm:$0xff]  ;;  %s594_s3 = smov [#allocation10]  }
  0x41   :  { %401 = vmatprep.subr.mxu0 %v592_v2  ;;  %431 = vmatpush3.msra.mxu1 %v234_v35 }
  0x42   :  { %402 = vmatpush3.msra.mxu0 %v132_v9  ;;  %432 = vmatprep.subr.mxu1 %v592_v2 }
  0x43   :  { %403 = vmatprep.subr.mxu0 %v592_v2  ;;  %433 = vmatpush3.msra.mxu1 %v233_v36 }
  0x44   :  { %404 = vmatpush3.msra.mxu0 %v131_v10  ;;  %434 = vmatprep.subr.mxu1 %v592_v2  ;;  %v350_v10 = vld [vmem:[%s691_s5] ss:$0 sm:$0xff]  ;;  %s337_s5 = sshll.u32 %s594_s3, 4  ;;  %s338_s5 = int_to_ptr.vmem [resolvable:$true] %s337_s5 }
  0x45   :  { %405 = vmatprep.subr.mxu0 %v592_v2  ;;  %435 = vmatpush3.msra.mxu1 %v232_v37  ;;  %s556_s21 = scalar_lea.vmem %s338_s5, 32  ;;  %p561_p7 = scmp.lt.s32.totalorder %s338_s5, %s338_s5 }
  0x46   :  { %406 = vmatpush3.msra.mxu0 %v130_v15  ;;  %436 = vmatprep.subr.mxu1 %v592_v2  ;;  %p557_p6 = scmp.ne.s32.totalorder %s338_s5, %s556_s21  ;;  %p562_p8 = scmp.lt.s32.totalorder %s556_s21, %s556_s21 }
  0x47   :  { %407 = vmatprep.subr.mxu0 %v592_v2  ;;  %437 = vmatpush3.msra.mxu1 %v231_v38 }
  0x48   :  { %408 = vmatpush3.msra.mxu0 %v129_v16  ;;  %438 = vmatprep.subr.mxu1 %v592_v2  ;;  %p563_p9 = por %p562_p8, %p561_p7 }
  0x49   :  { %409 = vmatprep.subr.mxu0 %v592_v2  ;;  %439 = vmatpush3.msra.mxu1 %v230_v39 }
  0x4a   :  { %410 = vmatpush3.msra.mxu0 %v128_v18  ;;  %440 = vmatprep.subr.mxu1 %v592_v2  ;;  %p564_p10 = pnand %p563_p9, %p557_p6 }
  0x4b   :  { %411 = vmatprep.subr.mxu0 %v592_v2  ;;  %441 = vmatpush3.msra.mxu1 %v229_v40 }
  0x4c   :  { %412 = vmatpush3.msra.mxu0 %v127_v19  ;;  %442 = vmatprep.subr.mxu1 %v592_v2 }
  0x4d   :  { %413 = vmatprep.subr.mxu0 %v592_v2  ;;  %443 = vmatpush3.msra.mxu1 %v228_v41 }
  0x4e   :  { %414 = vmatpush3.msra.mxu0 %v126_v25  ;;  %444 = vmatprep.subr.mxu1 %v592_v2 }
  0x4f   :  { %415 = vmatprep.subr.mxu0 %v592_v2  ;;  %445 = vmatpush3.msra.mxu1 %v227_v42 }
  0x50   :  { %416 = vmatpush3.msra.mxu0 %v125_v27  ;;  %446 = vmatprep.subr.mxu1 %v592_v2 }
  0x51   :  { %417 = vmatprep.subr.mxu0 %v592_v2  ;;  %447 = vmatpush3.msra.mxu1 %v226_v43 }
  0x52   :  { %418 = vmatpush3.msra.mxu0 %v124_v28  ;;  %448 = vmatprep.subr.mxu1 %v592_v2 }
  0x53   :  { %419 = vmatprep.subr.mxu0 %v592_v2  ;;  %449 = vmatpush3.msra.mxu1 %v225_v44 }
  0x54   :  { %420 = vmatpush3.msra.mxu0 %v123_v31  ;;  %450 = vmatprep.subr.mxu1 %v592_v2 }
  0x55   :  { %451 = vmatpush3.msra.mxu1 %v224_v1 }
  0x56   :  { %452 = vmatprep.subr.mxu1 %v592_v2 }
  0x57   :  { %453 = vmatpush3.msra.mxu1 %v223_v3 }
  0x58   :  { %454 = vmatprep.subr.mxu1 %v592_v2 }
  0x59   :  { %455 = vmatpush3.msra.mxu1 %v222_v4 }
  0xbf   :  { %v85_v11 = vpop.xlane.xlu0 %84 }
  0xc0   :  { %v86_v12 = vmax.f32 %v85_v11, 1.0 }
  0xc2   :  { %470 = vrcp.f32 %v86_v12 }
  0xcf   :  { %v471_v20 = vpop.eup %470 }
  0xd0   :  { %v90_v22 = vmul.f32 %v471_v20, %v81_v0 }
  0xd2   :  { %v94_v26 = vadd.f32 %v348_v21, %v90_v22 }
  0xd4   :  { %v105_v29 = vrot.slane %v94_v26, %v104_v23  ;;  %v98_v30 = vrot.slane %v94_v26, %v97_v24 }
  0xd6   :  { %107 = vbcast.lane.b32.xlu1 %v105_v29, 256  ;;  %100 = vbcast.lane.b32.xlu0 %v98_v30, 256 }
 0x148   :  { %v108_v48 = vpop.permute.xlu1 %107  ;;  %v101_v49 = vpop.permute.xlu0 %100 }
 0x149   :  { %v110_v50 = vmul.f32 %v354_v46, %v108_v48  ;;  %v109_v51 = vmul.f32 %v353_v47, %v101_v49 }
 0x14b   :  { %v117_v52 = vrot.slane %v110_v50, 4  ;;  %v111_v53 = vrot.slane %v109_v51, 4 }
 0x14d   :  { %v118_v54 = vadd.f32 %v117_v52, %v110_v50  ;;  %v112_v55 = vadd.f32 %v111_v53, %v109_v51 }
 0x14f   :  { %v119_v56 = vrot.slane %v118_v54, 2  ;;  %v113_v57 = vrot.slane %v112_v55, 2 }
 0x151   :  { %v120_v58 = vadd.f32 %v119_v56, %v118_v54  ;;  %v114_v59 = vadd.f32 %v113_v57, %v112_v55 }
 0x153   :  { %v121_v60 = vrot.slane %v120_v58, 1  ;;  %v115_v61 = vrot.slane %v114_v59, 1 }
 0x155   :  { %v116_v62 = vadd.f32 %v115_v61, %v114_v59  ;;  %v122_v63 = vadd.f32 %v121_v60, %v120_v58 }
 0x157   :  { %v149_v0 = vsel %vm148_vm3, %v122_v63, %v116_v62 }
 0x158   :  { %422 = vmatmul.mubr.f32.vlgmr.msra.gmra.mxu0 %v149_v0 }
 0x218   :  { %v217_v6 = vpop.f32.mrf.mxu0 }
 0x219   :  { %v218_v7 = vadd.f32 %v349_v5, %v217_v6 }
 0x21a   :  { %v423_v8 = vpop.f32.mrf.mxu0 }
 0x21b   :  { %v221_v9 = vmax.f32 %v218_v7, 0.0 }
 0x21d   :  { %457 = vmatmul.mubr.f32.vlgmr.msra.gmra.mxu1 %v221_v9 }
 0x2dd   :  { %v311_v11 = vpop.f32.mrf.mxu1 }
 0x2de   :  { %v312_v12 = vadd.f32 %v350_v10, %v311_v11 }
 0x2df   :  { %v458_v13 = vpop.f32.mrf.mxu1 }
 0x2e0   :  { %v315_v2 = vmul.f32 %v312_v12, %v312_v12 }
 0x2e2   :  { %v317_v14 = vsel %vm316_vm4, %v315_v2, 0.0 }
 0x2e3   :  { %318 = vadd.xlane.f32.xlu1 %v317_v14 }
 0x36c   :  { %v319_v15 = vpop.xlane.xlu1 %318 }
 0x36d   :  { %472 = vrsqrt.f32 %v319_v15  ;;  %vm322_vm5 = vcmp.eq.f32.partialorder %v319_v15, inf  ;;  %v325_v18 = vand.u32 2147483648, %v319_v15  ;;  %vm324_vm6 = vcmp.eq.f32.partialorder %v319_v15, 0.0 }
 0x37a   :  { %v473_v16 = vpop.eup %472 }
 0x37b   :  { %v321_v17 = vmul.f32 %v473_v16, %v319_v15 }
 0x37d   :  { %v323_v19 = vsel %vm322_vm5, %v319_v15, %v321_v17 }
 0x37e   :  { %v326_v20 = vsel %vm324_vm6, %v325_v18, %v323_v19 }
 0x37f   :  { %v327_v21 = vmax.f32 %v326_v20, 1e-12 }
 0x381   :  { %474 = vrcp.f32 %v327_v21 }
 0x38e   :  { %v475_v22 = vpop.eup %474 }
 0x38f   :  { %v329_v23 = vmul.f32 %v475_v22, %v312_v12 }
 0x391   :  { %330 = vst [vmem:[#allocation10] sm:$0x3] %v329_v23 }
 0x392   :  { %567 = shalt.err (!%p564_p10)
}
 0x393   :  { %340 = dma.vmem_to_hbm [thread:$0]  %s338_s5, 32, %s692_s6, [#allocation4]  }
 0x394   :  { %582 = dma.done.wait [#allocation4], 32  }
 0x395   :  { %583 = vsyncadd [#allocation4], 4294967264 }
 0x396   :  { %344 = vsyncpa [#allocation3], 1 }
 0x397   :  { %345 = vsyncpa [#allocation6], 1 }
 0x398   :  { %346 = vsyncpa [#allocation9], 1 }
 0x399   :  { %347 = vsyncpa [#allocation4], 1 }

</bundles_post_ra>
